<compile_context>
chip_gen: v7x
topology: tpu7x:2x2x1
jax: 0.10.0
libtpu: 0.0.40
codegen_flags: <defaults>
</compile_context>

<pallas_src>
import jax
import jax.numpy as jnp
from jax.experimental import pallas as pl
from jax.experimental.pallas import tpu as pltpu

_LANE = 128
_BN_EPS = 1e-5


def _round_up(x, m):
    return ((x + m - 1) // m) * m


def _reward_kernel(x_ref,
                   w1_ref, b1_ref,
                   w2_ref, b2_ref,
                   w3_ref, b3_ref,
                   w4_ref, b4_ref,
                   out_ref):
    """relu(x@W1+b1) -> relu(.@W2+b2) -> relu(.@W3+b3) -> .@W4+b4 -> softmax."""
    num_atoms = out_ref.shape[-1]

    # Activations stay f32; only the MXU operands are bf16 (v5e-friendly).
    x = x_ref[...].astype(jnp.bfloat16)

    h = jnp.dot(x, w1_ref[...], preferred_element_type=jnp.float32) + b1_ref[...]
    h = jnp.maximum(h, 0.0)

    h = jnp.dot(h.astype(jnp.bfloat16), w2_ref[...],
                preferred_element_type=jnp.float32) + b2_ref[...]
    h = jnp.maximum(h, 0.0)

    h = jnp.dot(h.astype(jnp.bfloat16), w3_ref[...],
                preferred_element_type=jnp.float32) + b3_ref[...]
    h = jnp.maximum(h, 0.0)

    logits = jnp.dot(h.astype(jnp.bfloat16), w4_ref[...],
                     preferred_element_type=jnp.float32) + b4_ref[...]

    # Drop the lane-padding atoms *before* the softmax: the matmul stays
    # lane-dense (N = 128) but the exp/sum/divide and the HBM writeback only
    # touch the real `num_atoms` columns.
    logits = logits[:, :num_atoms]
    m = jnp.max(logits, axis=-1, keepdims=True)
    e = jnp.exp(logits - m)
    denom = jnp.sum(e, axis=-1, keepdims=True)
    # Exact divide (not approx reciprocal): the output is a probability
    # distribution consumed downstream (preference_logp), keep it normalized.
    out_ref[...] = (e / denom).astype(out_ref.dtype)


def categorical_reward_forward(state, params, *, batch_tile=512):
    """state: (B, state_dim) f32 -> (B, num_atoms) softmax distribution."""
    B, S = state.shape
    S_pad, H = params["w1"].shape
    A_pad = params["w4"].shape[1]
    A = params["num_atoms"]
    assert S == params["state_dim"]

    # Balanced batch tiles (multiples of 8 sublanes).  Use >= 2 grid steps
    # whenever the batch is big enough so the "parallel" batch axis can shard
    # across v7x's two TensorCores; the extra step costs only ~0.35us on the
    # single-TC v5e/v6e.
    n_tiles = max(pl.cdiv(B, batch_tile), min(2, pl.cdiv(B, 8)))
    bt = _round_up(pl.cdiv(B, n_tiles), 8)
    grid = pl.cdiv(B, bt)
    B_pad = grid * bt

    # Single cheap pad op: feature dim S -> S_pad (bf16 K tile of 16) plus at
    # most bt-1 zero rows on the batch tail (usually 0).  No full padded copy
    # of the batch and no wrapper-side output slice over the atom dim.
    x = jnp.pad(state, ((0, B_pad - B), (0, S_pad - S)))

    def full(arr):
        # Resident across all grid steps (constant index_map).
        return pl.BlockSpec(arr.shape, lambda i: (0, 0))

    in_specs = [
        pl.BlockSpec((bt, S_pad), lambda i: (i, 0)),   # state tile
        full(params["w1"]), full(params["b1"]),
        full(params["w2"]), full(params["b2"]),
        full(params["w3"]), full(params["b3"]),
        full(params["w4"]), full(params["b4"]),
    ]
    # Compact output block: last dim equals the full output dim (legal even
    # though < 128 lanes); masked stores, but 16x less HBM writeback.
    out_spec = pl.BlockSpec((bt, A), lambda i: (i, 0))

    flops = 2 * B_pad * (S_pad * H + 2 * H * H + H * A_pad)
    weight_bytes = sum(int(params[k].size) * params[k].dtype.itemsize
                       for k in ("w1", "b1", "w2", "b2", "w3", "b3", "w4", "b4"))
    bytes_accessed = int(x.size) * 4 + weight_bytes + B_pad * A * 4
    cost = pl.CostEstimate(flops=flops,
                           transcendentals=B_pad * A,
                           bytes_accessed=bytes_accessed)

    out = pl.pallas_call(
        _reward_kernel,
        out_shape=jax.ShapeDtypeStruct((B_pad, A), jnp.float32),
        grid=(grid,),
        in_specs=in_specs,
        out_specs=out_spec,
        compiler_params=pltpu.CompilerParams(
            dimension_semantics=("parallel",)),
        cost_estimate=cost,
    )(x,
      params["w1"], params["b1"],
      params["w2"], params["b2"],
      params["w3"], params["b3"],
      params["w4"], params["b4"])

    return out if B_pad == B else out[:B]


# ----------------------------------------------------------------------------
# Parameter construction / folding and references
# ----------------------------------------------------------------------------

def make_raw_params(key, state_dim, hidden_dim, num_atoms):
    """Synthetic parameters with the same shapes/semantics as the PyTorch module.

    Linear weights are stored as (in_features, out_features); each BatchNorm
    carries (gamma, beta, running_mean, running_var) used in eval mode.
    """
    keys = jax.random.split(key, 20)
    p = {}

    def linear(kw, kb, fan_in, fan_out):
        bound = 1.0 / float(fan_in) ** 0.5
        w = jax.random.uniform(kw, (fan_in, fan_out), jnp.float32, -bound, bound)
        b = jax.random.uniform(kb, (fan_out,), jnp.float32, -bound, bound)
        return w, b

    def bn(kg, kb, km, kv, n):
        gamma = 1.0 + 0.1 * jax.random.normal(kg, (n,), jnp.float32)
        beta = 0.1 * jax.random.normal(kb, (n,), jnp.float32)
        rmean = 0.1 * jax.random.normal(km, (n,), jnp.float32)
        rvar = 1.0 + 0.1 * jnp.abs(jax.random.normal(kv, (n,), jnp.float32))
        return gamma, beta, rmean, rvar

    p["w1"], p["b1"] = linear(keys[0], keys[1], state_dim, hidden_dim)
    p["g1"], p["be1"], p["m1"], p["v1"] = bn(keys[2], keys[3], keys[4], keys[5], hidden_dim)
    p["w2"], p["b2"] = linear(keys[6], keys[7], hidden_dim, hidden_dim)
    p["g2"], p["be2"], p["m2"], p["v2"] = bn(keys[8], keys[9], keys[10], keys[11], hidden_dim)
    p["w3"], p["b3"] = linear(keys[12], keys[13], hidden_dim, hidden_dim)
    p["g3"], p["be3"], p["m3"], p["v3"] = bn(keys[14], keys[15], keys[16], keys[17], hidden_dim)
    p["w4"], p["b4"] = linear(keys[18], keys[19], hidden_dim, num_atoms)
    return p


def fold_params(raw):
    """Fold eval-mode BatchNorm + bias into the linear weights and pad for TPU.

    Hidden layers: relu((x @ W + b) * s + t) == relu(x @ (W * s) + (b * s + t)),
    with s = gamma / sqrt(var + eps), t = beta - mean * s.
    The first matmul's K dim is padded to 16 (bf16 sublane tile); the logits
    axis is zero-padded to 128 lanes (the pad atoms are sliced off inside the
    kernel before the softmax).  Weights are bf16 (MXU operands); biases f32.
    """
    S, H = raw["w1"].shape
    A = raw["w4"].shape[1]

    def fold(w, b, g, be, m, v):
        s = g / jnp.sqrt(v + _BN_EPS)
        t = be - m * s
        return w * s[None, :], b * s + t

    w1, b1 = fold(raw["w1"], raw["b1"], raw["g1"], raw["be1"], raw["m1"], raw["v1"])
    w2, b2 = fold(raw["w2"], raw["b2"], raw["g2"], raw["be2"], raw["m2"], raw["v2"])
    w3, b3 = fold(raw["w3"], raw["b3"], raw["g3"], raw["be3"], raw["m3"], raw["v3"])
    w4, b4 = raw["w4"], raw["b4"]

    S_pad = _round_up(S, 16)       # bf16 K-edge tile
    A_pad = _round_up(A, _LANE)    # lane-dense N for the last matmul

    w1_p = jnp.zeros((S_pad, H), jnp.float32).at[:S, :].set(w1)
    w4_p = jnp.zeros((H, A_pad), jnp.float32).at[:, :A].set(w4)
    b4_p = jnp.zeros((A_pad,), jnp.float32).at[:A].set(b4)

    # TODO(synk): optional fp8 weight storage on v7x (bf16+fp8 MXU) would
    # halve the resident-weight DMA; kept bf16 for accuracy/portability.
    return {
        "w1": w1_p.astype(jnp.bfloat16), "b1": b1.reshape(1, H),
        "w2": w2.astype(jnp.bfloat16),   "b2": b2.reshape(1, H),
        "w3": w3.astype(jnp.bfloat16),   "b3": b3.reshape(1, H),
        "w4": w4_p.astype(jnp.bfloat16), "b4": b4_p.reshape(1, A_pad),
        "num_atoms": A, "state_dim": S,
    }


def reference_forward_raw(state, r):
    """Full-precision reference matching the PyTorch module (eval-mode BN)."""
    def bn(x, g, be, m, v):
        return (x - m) / jnp.sqrt(v + _BN_EPS) * g + be

    h = state @ r["w1"] + r["b1"]
    h = jnp.maximum(bn(h, r["g1"], r["be1"], r["m1"], r["v1"]), 0.0)
    h = h @ r["w2"] + r["b2"]
    h = jnp.maximum(bn(h, r["g2"], r["be2"], r["m2"], r["v2"]), 0.0)
    h = h @ r["w3"] + r["b3"]
    h = jnp.maximum(bn(h, r["g3"], r["be3"], r["m3"], r["v3"]), 0.0)
    logits = h @ r["w4"] + r["b4"]
    return jax.nn.softmax(logits, axis=-1)


def reference_forward_folded(state, p):
    """Reference matching the kernel's numerics (bf16 matmul operands, f32 acc)."""
    B, S = state.shape
    S_pad = p["w1"].shape[0]
    x = jnp.pad(state, ((0, 0), (0, S_pad - S)))

    def mm(a, w):
        return jax.lax.dot(a.astype(jnp.bfloat16), w,
                           preferred_element_type=jnp.float32)

    h = jnp.maximum(mm(x, p["w1"]) + p["b1"], 0.0)
    h = jnp.maximum(mm(h, p["w2"]) + p["b2"], 0.0)
    h = jnp.maximum(mm(h, p["w3"]) + p["b3"], 0.0)
    logits = mm(h, p["w4"]) + p["b4"]
    return jax.nn.softmax(logits[:, : p["num_atoms"]], axis=-1)


if __name__ == "__main__":
    # state_dim != 1 -> num_atoms defaults to 8 (per CategoricalRewardModel.__init__)
    STATE_DIM = 4
    HIDDEN_DIM = 128
    NUM_ATOMS = 8
    BATCH = 16

    key = jax.random.PRNGKey(0)
    k_params, k_state = jax.random.split(key)
    raw = make_raw_params(k_params, STATE_DIM, HIDDEN_DIM, NUM_ATOMS)
    folded = fold_params(raw)
    state = jax.random.normal(k_state, (BATCH, STATE_DIM), jnp.float32)

    out = jax.block_until_ready(categorical_reward_forward(state, folded))
    assert out.shape == (BATCH, NUM_ATOMS)

    # Matches a reference with identical bf16/f32 numerics (exact softmax).
    ref_matched = reference_forward_folded(state, folded)
    assert jnp.allclose(out, ref_matched, atol=1e-4, rtol=0), \
        float(jnp.max(jnp.abs(out - ref_matched)))

    # Sanity check against the full-precision, unfolded (PyTorch-style) math.
    ref_f32 = reference_forward_raw(state, raw)
    assert jnp.allclose(out, ref_f32, atol=2e-2, rtol=0), \
        float(jnp.max(jnp.abs(out - ref_f32)))

    # Rows are valid probability distributions (exact divide in the kernel).
    assert jnp.allclose(jnp.sum(out, axis=-1), 1.0, atol=1e-5)

    # Ragged batch: exercises balanced tiling + batch-tail padding path.
    state2 = jax.random.normal(jax.random.PRNGKey(1), (37, STATE_DIM), jnp.float32)
    out2 = jax.block_until_ready(categorical_reward_forward(state2, folded))
    assert out2.shape == (37, NUM_ATOMS)
    ref2 = reference_forward_folded(state2, folded)
    assert jnp.allclose(out2, ref2, atol=1e-4, rtol=0), \
        float(jnp.max(jnp.abs(out2 - ref2)))

    print("KERNEL_OK")
</pallas_src>

<mosaic_0001>
module attributes {stable_mosaic.version = 11 : i64} {
  func.func @_reward_kernel(%arg0: i32, %arg1: memref<8x16xf32, #tpu.memory_space<vmem>>, %arg2: memref<16x128xbf16, #tpu.memory_space<vmem>>, %arg3: memref<1x128xf32, #tpu.memory_space<vmem>>, %arg4: memref<128x128xbf16, #tpu.memory_space<vmem>>, %arg5: memref<1x128xf32, #tpu.memory_space<vmem>>, %arg6: memref<128x128xbf16, #tpu.memory_space<vmem>>, %arg7: memref<1x128xf32, #tpu.memory_space<vmem>>, %arg8: memref<128x128xbf16, #tpu.memory_space<vmem>>, %arg9: memref<1x128xf32, #tpu.memory_space<vmem>>, %arg10: memref<8x8xf32, #tpu.memory_space<vmem>>) attributes {dimension_semantics = [#tpu.dimension_semantics<parallel>], iteration_bounds = array<i64: 2>, scalar_prefetch = 0 : i64, scratch_operands = 0 : i64, tpu.core_type = #tpu.core_type<tc>, window_params = [{transform_indices = @transform_0, window_bounds = array<i64: 8, 16>}, {pipeline_mode = #tpu.pipeline_mode<synchronous>, transform_indices = @transform_1, window_bounds = array<i64: 16, 128>}, {pipeline_mode = #tpu.pipeline_mode<synchronous>, transform_indices = @transform_2, window_bounds = array<i64: 1, 128>}, {pipeline_mode = #tpu.pipeline_mode<synchronous>, transform_indices = @transform_3, window_bounds = array<i64: 128, 128>}, {pipeline_mode = #tpu.pipeline_mode<synchronous>, transform_indices = @transform_4, window_bounds = array<i64: 1, 128>}, {pipeline_mode = #tpu.pipeline_mode<synchronous>, transform_indices = @transform_5, window_bounds = array<i64: 128, 128>}, {pipeline_mode = #tpu.pipeline_mode<synchronous>, transform_indices = @transform_6, window_bounds = array<i64: 1, 128>}, {pipeline_mode = #tpu.pipeline_mode<synchronous>, transform_indices = @transform_7, window_bounds = array<i64: 128, 128>}, {pipeline_mode = #tpu.pipeline_mode<synchronous>, transform_indices = @transform_8, window_bounds = array<i64: 1, 128>}, {transform_indices = @transform_9, window_bounds = array<i64: 8, 8>}]} {
    %c0 = arith.constant 0 : index
    %c0_0 = arith.constant 0 : index
    %0 = vector.load %arg1[%c0, %c0_0] : memref<8x16xf32, #tpu.memory_space<vmem>>, vector<8x16xf32>
    %1 = arith.truncf %0 : vector<8x16xf32> to vector<8x16xbf16>
    %c0_1 = arith.constant 0 : index
    %c0_2 = arith.constant 0 : index
    %2 = vector.load %arg2[%c0_1, %c0_2] : memref<16x128xbf16, #tpu.memory_space<vmem>>, vector<16x128xbf16>
    %cst = arith.constant dense<0.000000e+00> : vector<8x128xf32>
    %3 = tpu.matmul %1, %2, %cst {dimension_numbers = #tpu.dot_dimension_numbers<[1], [0], [0], [1], [0, 0, 1, 1], [], []>} : vector<8x16xbf16>, vector<16x128xbf16>, vector<8x128xf32> -> vector<8x128xf32>
    %c0_3 = arith.constant 0 : index
    %c0_4 = arith.constant 0 : index
    %4 = vector.load %arg3[%c0_3, %c0_4] : memref<1x128xf32, #tpu.memory_space<vmem>>, vector<1x128xf32>
    %5 = vector.broadcast %4 : vector<1x128xf32> to vector<8x128xf32>
    %6 = arith.addf %3, %5 : vector<8x128xf32>
    %cst_5 = arith.constant 0.000000e+00 : f32
    %7 = vector.broadcast %cst_5 : f32 to vector<8x128xf32>
    %8 = arith.maximumf %6, %7 : vector<8x128xf32>
    %9 = arith.truncf %8 : vector<8x128xf32> to vector<8x128xbf16>
    %c0_6 = arith.constant 0 : index
    %c0_7 = arith.constant 0 : index
    %10 = vector.load %arg4[%c0_6, %c0_7] : memref<128x128xbf16, #tpu.memory_space<vmem>>, vector<128x128xbf16>
    %cst_8 = arith.constant dense<0.000000e+00> : vector<8x128xf32>
    %11 = tpu.matmul %9, %10, %cst_8 {dimension_numbers = #tpu.dot_dimension_numbers<[1], [0], [0], [1], [0, 0, 1, 1], [], []>} : vector<8x128xbf16>, vector<128x128xbf16>, vector<8x128xf32> -> vector<8x128xf32>
    %c0_9 = arith.constant 0 : index
    %c0_10 = arith.constant 0 : index
    %12 = vector.load %arg5[%c0_9, %c0_10] : memref<1x128xf32, #tpu.memory_space<vmem>>, vector<1x128xf32>
    %13 = vector.broadcast %12 : vector<1x128xf32> to vector<8x128xf32>
    %14 = arith.addf %11, %13 : vector<8x128xf32>
    %cst_11 = arith.constant 0.000000e+00 : f32
    %15 = vector.broadcast %cst_11 : f32 to vector<8x128xf32>
    %16 = arith.maximumf %14, %15 : vector<8x128xf32>
    %17 = arith.truncf %16 : vector<8x128xf32> to vector<8x128xbf16>
    %c0_12 = arith.constant 0 : index
    %c0_13 = arith.constant 0 : index
    %18 = vector.load %arg6[%c0_12, %c0_13] : memref<128x128xbf16, #tpu.memory_space<vmem>>, vector<128x128xbf16>
    %cst_14 = arith.constant dense<0.000000e+00> : vector<8x128xf32>
    %19 = tpu.matmul %17, %18, %cst_14 {dimension_numbers = #tpu.dot_dimension_numbers<[1], [0], [0], [1], [0, 0, 1, 1], [], []>} : vector<8x128xbf16>, vector<128x128xbf16>, vector<8x128xf32> -> vector<8x128xf32>
    %c0_15 = arith.constant 0 : index
    %c0_16 = arith.constant 0 : index
    %20 = vector.load %arg7[%c0_15, %c0_16] : memref<1x128xf32, #tpu.memory_space<vmem>>, vector<1x128xf32>
    %21 = vector.broadcast %20 : vector<1x128xf32> to vector<8x128xf32>
    %22 = arith.addf %19, %21 : vector<8x128xf32>
    %cst_17 = arith.constant 0.000000e+00 : f32
    %23 = vector.broadcast %cst_17 : f32 to vector<8x128xf32>
    %24 = arith.maximumf %22, %23 : vector<8x128xf32>
    %25 = arith.truncf %24 : vector<8x128xf32> to vector<8x128xbf16>
    %c0_18 = arith.constant 0 : index
    %c0_19 = arith.constant 0 : index
    %26 = vector.load %arg8[%c0_18, %c0_19] : memref<128x128xbf16, #tpu.memory_space<vmem>>, vector<128x128xbf16>
    %cst_20 = arith.constant dense<0.000000e+00> : vector<8x128xf32>
    %27 = tpu.matmul %25, %26, %cst_20 {dimension_numbers = #tpu.dot_dimension_numbers<[1], [0], [0], [1], [0, 0, 1, 1], [], []>} : vector<8x128xbf16>, vector<128x128xbf16>, vector<8x128xf32> -> vector<8x128xf32>
    %c0_21 = arith.constant 0 : index
    %c0_22 = arith.constant 0 : index
    %28 = vector.load %arg9[%c0_21, %c0_22] : memref<1x128xf32, #tpu.memory_space<vmem>>, vector<1x128xf32>
    %29 = vector.broadcast %28 : vector<1x128xf32> to vector<8x128xf32>
    %30 = arith.addf %27, %29 : vector<8x128xf32>
    %31 = vector.extract_strided_slice %30 {offsets = [0, 0], sizes = [8, 8], strides = [1, 1]} : vector<8x128xf32> to vector<8x8xf32>
    %cst_23 = arith.constant dense<0xFF800000> : vector<8xf32>
    %32 = vector.multi_reduction <maximumf>, %31, %cst_23 [1] : vector<8x8xf32> to vector<8xf32>
    %33 = vector.shape_cast %32 : vector<8xf32> to vector<8x1xf32>
    %34 = vector.broadcast %33 : vector<8x1xf32> to vector<8x8xf32>
    %35 = arith.subf %31, %34 : vector<8x8xf32>
    %36 = math.exp %35 : vector<8x8xf32>
    %cst_24 = arith.constant dense<0.000000e+00> : vector<8xf32>
    %37 = vector.multi_reduction <add>, %36, %cst_24 [1] : vector<8x8xf32> to vector<8xf32>
    %38 = vector.shape_cast %37 : vector<8xf32> to vector<8x1xf32>
    %39 = vector.broadcast %38 : vector<8x1xf32> to vector<8x8xf32>
    %40 = arith.divf %36, %39 : vector<8x8xf32>
    %c0_25 = arith.constant 0 : index
    %c0_26 = arith.constant 0 : index
    %41 = vector.load %arg10[%c0_25, %c0_26] : memref<8x8xf32, #tpu.memory_space<vmem>>, vector<8x8xf32>
    tpu.vector_store %arg10[%c0_25, %c0_26], %40 {strides = array<i32>} : memref<8x8xf32, #tpu.memory_space<vmem>>, vector<8x8xf32>,
    return
  }
  func.func @transform_0(%arg0: i32) -> (i32, i32) {
    %c0_i32 = arith.constant 0 : i32
    %c0_i32_0 = arith.constant 0 : i32
    return %arg0, %c0_i32 : i32, i32
  }
  func.func @transform_1(%arg0: i32) -> (i32, i32) {
    %c0_i32 = arith.constant 0 : i32
    %c0_i32_0 = arith.constant 0 : i32
    %c0_i32_1 = arith.constant 0 : i32
    return %c0_i32, %c0_i32_0 : i32, i32
  }
  func.func @transform_2(%arg0: i32) -> (i32, i32) {
    %c0_i32 = arith.constant 0 : i32
    %c0_i32_0 = arith.constant 0 : i32
    %c0_i32_1 = arith.constant 0 : i32
    return %c0_i32, %c0_i32_0 : i32, i32
  }
  func.func @transform_3(%arg0: i32) -> (i32, i32) {
    %c0_i32 = arith.constant 0 : i32
    %c0_i32_0 = arith.constant 0 : i32
    %c0_i32_1 = arith.constant 0 : i32
    return %c0_i32, %c0_i32_0 : i32, i32
  }
  func.func @transform_4(%arg0: i32) -> (i32, i32) {
    %c0_i32 = arith.constant 0 : i32
    %c0_i32_0 = arith.constant 0 : i32
    %c0_i32_1 = arith.constant 0 : i32
    return %c0_i32, %c0_i32_0 : i32, i32
  }
  func.func @transform_5(%arg0: i32) -> (i32, i32) {
    %c0_i32 = arith.constant 0 : i32
    %c0_i32_0 = arith.constant 0 : i32
    %c0_i32_1 = arith.constant 0 : i32
    return %c0_i32, %c0_i32_0 : i32, i32
  }
  func.func @transform_6(%arg0: i32) -> (i32, i32) {
    %c0_i32 = arith.constant 0 : i32
    %c0_i32_0 = arith.constant 0 : i32
    %c0_i32_1 = arith.constant 0 : i32
    return %c0_i32, %c0_i32_0 : i32, i32
  }
  func.func @transform_7(%arg0: i32) -> (i32, i32) {
    %c0_i32 = arith.constant 0 : i32
    %c0_i32_0 = arith.constant 0 : i32
    %c0_i32_1 = arith.constant 0 : i32
    return %c0_i32, %c0_i32_0 : i32, i32
  }
  func.func @transform_8(%arg0: i32) -> (i32, i32) {
    %c0_i32 = arith.constant 0 : i32
    %c0_i32_0 = arith.constant 0 : i32
    %c0_i32_1 = arith.constant 0 : i32
    return %c0_i32, %c0_i32_0 : i32, i32
  }
  func.func @transform_9(%arg0: i32) -> (i32, i32) {
    %c0_i32 = arith.constant 0 : i32
    %c0_i32_0 = arith.constant 0 : i32
    return %arg0, %c0_i32 : i32, i32
  }
}

</mosaic_0001>

<bundles_post_ra>
// kernel: tpu_custom_call.1
= control target key start
LH: loop header
LB: loop body
LE: loop exit
PB: predicated region body
PF: predicated region fallthrough
CT: control target
= control target key end

     0   :  { %s1713_s0 = inlined_call_operand.hbm [shape: f32[16,16], index: 0, kind: input, shape index: {}]   ;;  %s1714_s1 = inlined_call_operand.hbm [shape: bf16[16,128], index: 1, kind: input, shape index: {}]   ;;  %s1715_s2 = inlined_call_operand.vmem [shape: f32[1,128], index: 2, kind: input, shape index: {}]   ;;  %s1716_s3 = inlined_call_operand.hbm [shape: bf16[128,128], index: 3, kind: input, shape index: {}]   ;;  %s1717_s4 = inlined_call_operand.vmem [shape: f32[1,128], index: 4, kind: input, shape index: {}]   ;;  %s1718_s5 = inlined_call_operand.hbm [shape: bf16[128,128], index: 5, kind: input, shape index: {}]   ;;  %s1719_s6 = inlined_call_operand.vmem [shape: f32[1,128], index: 6, kind: input, shape index: {}]   ;;  %s1720_s7 = inlined_call_operand.hbm [shape: bf16[128,128], index: 7, kind: input, shape index: {}]   ;;  %s1721_s8 = inlined_call_operand.vmem [shape: f32[1,128], index: 8, kind: input, shape index: {}]   ;;  %s1722_s9 = inlined_call_operand.vmem [shape: f32[16,8], index: 9, kind: output, shape index: {}]  }
   0x1   :  { %1725 = sst [smem:[#allocation13_spill]] %s1722_s9 }
   0x2   :  { %14 = vsyncpa [#allocation3], 0 }
   0x3   :  { %16 = vsyncpa [#allocation3 + $0x1], 0 }
   0x4   :  { %17 = vsyncpa [#allocation5], 0 }
   0x5   :  { %18 = vsyncpa [#allocation8], 0  ;;  %s1424_s30 = smov 0   ;;  %s1426_s10 = smov 0  }
   0x6   :  { %s1428_s11 = smov 0   ;;  %s1430_s12 = smov 0  }
   0x7 LB: > { %s1365_s13 = smov [#allocation4]   ;;  %s1445_s15 = sadd.s32 4294967295, %s1363_s12   ;;  %s1363_s12 = sphi %s1430_s12, %s1741_s12   ;;  %s1359_s11 = sphi %s1428_s11, %s1740_s11   ;;  %s1355_s10 = sphi %s1426_s10, %s1739_s10   ;;  %s1351_s30 = sphi %s1424_s30, %s1738_s30  }
   0x8   : > { %s261_s14 = sshll.u32 %s1365_s13, 4  ;;  %p924_p0 = scmp.ge.s32.totalorder %s1363_s12, 1  ;;  %s1450_s14 = int_to_ptr.vmem [resolvable:$true] %s261_s14 }
   0x9   : > { %p1723_p1 = scmp.eq.s32.totalorder %s1445_s15, 0  ;;  %p249_p2 = scmp.lt.s32.totalorder %s1363_s12, 3 }
   0xa   : > { %s1366_s17 = smov [#allocation7]   ;;  %s1367_s20 = smov [#allocation6]  }
   0xb   : > { %p1452_p3 = pnand %p924_p0, %p249_p2  ;;  %s293_s18 = sshll.u32 %s1366_s17, 4  ;;  %s1464_s18 = int_to_ptr.vmem [resolvable:$true] %s293_s18 }
   0xc   : > { %s277_s21 = sshll.u32 %s1367_s20, 4  ;;  %s1179_s24 = scalar_lea.hbm %s1714_s1, 128  ;;  %s1466_s21 = int_to_ptr.vmem [resolvable:$true] %s277_s21 }
   0xd   : > { %s1726_s16 = scalar_select %p1452_p3, 1, 0 }
   0xe   : > { %p1084_p4 = pneg %p1452_p3  ;;  %p1180_p6 = scmp.ne.s32.totalorder %s1714_s1, %s1179_s24 }
   0xf   : > { %p1186_p10 = scmp.lt.u32.totalorder %s1179_s24, %s1714_s1 }
  0x10   : > { %p1460_p5 = pnand %p1084_p4, %p1723_p1 }
  0x12   : > { %p1476_p7 = pneg %p1460_p5 }
  0x14   : > { %p1182_p8 = pnand %p1476_p7, %p1180_p6 }
  0x16   : > { %p1183_p9 = pneg %p1182_p8 }
  0x18   : > { %p1188_p11 = pnand %p1186_p10, %p1183_p9 }
  0x1a   : > { %1191 = shalt.err (!%p1188_p11)
}
  0x1b   : > { %s1192_s13 = scalar_lea.vmem %s1450_s14, 128  ;;  %p1200_p2 = scmp.lt.s32.totalorder %s1450_s14, %s1450_s14 }
  0x1c   : > { %p1193_p12 = scmp.ne.s32.totalorder %s1450_s14, %s1192_s13  ;;  %p1201_p4 = scmp.lt.s32.totalorder %s1192_s13, %s1192_s13 }
  0x1e   : > { %p1195_p13 = pnand %p1193_p12, %p1476_p7  ;;  %p1202_p6 = por %p1201_p4, %p1200_p2 }
  0x20   : > { %p1196_p0 = pneg %p1195_p13 }
  0x22   : > { %p1203_p8 = pnand %p1202_p6, %p1196_p0 }
  0x24   : > { %1206 = shalt.err (!%p1203_p8)
}
  0x25   : > { %s1368_s17 = smov 64   ;;  %s1369_s20 = smov 4  }
  0x26   : > { %1087 = dma.hbm_to_vmem [thread:$0]  (!%p1460_p5), %s1714_s1, 128, %s1450_s14, [#allocation5], %s1368_s17, %s1368_s17, %s1369_s20  }
  0x27   : > { %s1207_s26 = scalar_lea.hbm %s1718_s5, 1024 }
  0x28   : > { %p1208_p9 = scmp.ne.s32.totalorder %s1718_s5, %s1207_s26  ;;  %p1214_p12 = scmp.lt.u32.totalorder %s1207_s26, %s1718_s5 }
  0x2a   : > { %p1210_p10 = pnand %p1208_p9, %p1476_p7 }
  0x2c   : > { %p1211_p11 = pneg %p1210_p10 }
  0x2e   : > { %p1216_p13 = pnand %p1214_p12, %p1211_p11 }
  0x30   : > { %1219 = shalt.err (!%p1216_p13)
}
  0x31   : > { %s1220_s14 = scalar_lea.vmem %s1464_s18, 1024  ;;  %p1228_p6 = scmp.lt.s32.totalorder %s1464_s18, %s1464_s18 }
  0x32   : > { %p1221_p0 = scmp.ne.s32.totalorder %s1464_s18, %s1220_s14  ;;  %p1229_p8 = scmp.lt.s32.totalorder %s1220_s14, %s1220_s14 }
  0x34   : > { %p1223_p2 = pnand %p1221_p0, %p1476_p7  ;;  %p1230_p9 = por %p1229_p8, %p1228_p6 }
  0x36   : > { %p1224_p4 = pneg %p1223_p2 }
  0x38   : > { %p1231_p10 = pnand %p1230_p9, %p1224_p4 }
  0x3a   : > { %1234 = shalt.err (!%p1231_p10)
}
  0x3b   : > { %1093 = dma.hbm_to_vmem [thread:$0]  (!%p1460_p5), %s1718_s5, 1024, %s1464_s18, [#allocation8], %s1368_s17, %s1368_s17, %s1369_s20  }
  0x3c   : > { %s1235_s25 = scalar_lea.hbm %s1716_s3, 1024 }
  0x3d   : > { %p1236_p11 = scmp.ne.s32.totalorder %s1716_s3, %s1235_s25  ;;  %p1242_p0 = scmp.lt.u32.totalorder %s1235_s25, %s1716_s3 }
  0x3f   : > { %p1238_p12 = pnand %p1236_p11, %p1476_p7 }
  0x41   : > { %p1239_p13 = pneg %p1238_p12 }
  0x43   : > { %p1244_p2 = pnand %p1242_p0, %p1239_p13 }
  0x45   : > { %1247 = shalt.err (!%p1244_p2)
}
  0x46   : > { %s1248_s18 = scalar_lea.vmem %s1466_s21, 1024  ;;  %p1256_p9 = scmp.lt.s32.totalorder %s1466_s21, %s1466_s21 }
  0x47   : > { %p1249_p4 = scmp.ne.s32.totalorder %s1466_s21, %s1248_s18  ;;  %p1257_p10 = scmp.lt.s32.totalorder %s1248_s18, %s1248_s18 }
  0x49   : > { %p1251_p6 = pnand %p1249_p4, %p1476_p7  ;;  %p1258_p11 = por %p1257_p10, %p1256_p9 }
  0x4b   : > { %p1252_p8 = pneg %p1251_p6 }
  0x4d   : > { %p1259_p12 = pnand %p1258_p11, %p1252_p8 }
  0x4f   : > { %1262 = shalt.err (!%p1259_p12)
}
  0x50   : > { %1090 = dma.hbm_to_vmem [thread:$0]  (!%p1460_p5), %s1716_s3, 1024, %s1466_s21, [#allocation5], %s1368_s17, %s1368_s17, %s1369_s20  }
  0x51   : > { %s1370_s22 = smov [#allocation9]   ;;  %s1263_s26 = scalar_lea.hbm %s1720_s7, 1024 }
  0x52   : > { %s309_s23 = sshll.u32 %s1370_s22, 4  ;;  %p1264_p13 = scmp.ne.s32.totalorder %s1720_s7, %s1263_s26  ;;  %s310_s23 = int_to_ptr.vmem [resolvable:$true] %s309_s23 }
  0x53   : > { %p1270_p4 = scmp.lt.u32.totalorder %s1263_s26, %s1720_s7 }
  0x54   : > { %p1266_p0 = pnand %p1264_p13, %p1476_p7 }
  0x56   : > { %p1267_p2 = pneg %p1266_p0 }
  0x58   : > { %p1272_p6 = pnand %p1270_p4, %p1267_p2 }
  0x5a   : > { %1275 = shalt.err (!%p1272_p6)
}
  0x5b   : > { %s1276_s21 = scalar_lea.vmem %s310_s23, 1024  ;;  %p1284_p11 = scmp.lt.s32.totalorder %s310_s23, %s310_s23 }
  0x5c   : > { %p1277_p8 = scmp.ne.s32.totalorder %s310_s23, %s1276_s21  ;;  %p1285_p12 = scmp.lt.s32.totalorder %s1276_s21, %s1276_s21 }
  0x5e   : > { %p1279_p9 = pnand %p1277_p8, %p1476_p7  ;;  %p1286_p1 = por %p1285_p12, %p1284_p11 }
  0x60   : > { %p1280_p10 = pneg %p1279_p9 }
  0x62   : > { %p1287_p3 = pnand %p1286_p1, %p1280_p10 }
  0x64   : > { %1290 = shalt.err (!%p1287_p3)
}
  0x65   : > { %1096 = dma.hbm_to_vmem [thread:$0]  (!%p1460_p5), %s1720_s7, 1024, %s310_s23, [#allocation8], %s1368_s17, %s1368_s17, %s1369_s20  }
  0x66   : > { %s1574_s19 = sadd.s32 1, %s1363_s12   ;;  %s31_s27 = sadd.s32 1, %s1359_s11 }
  0x67   : > { %s28_s22 = ssub.s32 %s1363_s12, %s1574_s19  ;;  %p38_p1 = scmp.ne.s32.totalorder %s1359_s11, %s1355_s10 }
  0x68   : > { %p29_p3 = scmp.eq.s32.totalorder %s28_s22, 0  ;;  %p39_p7 = scmp.eq.s32.totalorder %s1363_s12, 0 }
  0x69   : > { %p44_p13 = scmp.ne.s32.totalorder %s1355_s10, %s1351_s30  ;;  %p1105_p0 = scmp.lt.s32.totalorder %s1363_s12, 2 }
  0x6a   : > { %s1586_s24 = scalar_select %p29_p3, %s1359_s11, %s31_s27  }
  0x6b   : > { %p40_p2 = por %p39_p7, %p38_p1  ;;  %p1729_p4 = scmp.eq.s32.totalorder %s1445_s15, 0 }
  0x6c   : > { %s326_s26 = sand.u32 1, %s1359_s11   ;;  %s931_s17 = sshll.u32 %s1363_s12, 7 }
  0x6d   : > { %p1590_p6 = por %p1729_p4, %p44_p13  ;;  %s930_s20 = sshll.u32 %s326_s26, 3 }
  0x6e   : > { %s1599_s29 = scalar_lea.hbm %s1713_s0, %s931_s17  ;;  %s330_s30 = scalar_lea.vmem [#allocation2], %s930_s20 }
  0x6f   : > { %s337_s13 = sshll.u32 %s330_s30, 4  ;;  %p1601_p5 = pnand %p1105_p0, %p40_p2  ;;  %s1605_s13 = int_to_ptr.vmem [resolvable:$true] %s337_s13 }
  0x70   : > { %s327_s12 = scalar_lea.sflag [#allocation3], %s326_s26  ;;  %s1291_s21 = scalar_lea.hbm %s1599_s29, 128 }
  0x71   : > { %p1292_p8 = scmp.ne.s32.totalorder %s1599_s29, %s1291_s21  ;;  %p1293_p9 = pneg %p1601_p5 }
  0x72   : > { %s1296_s27 = scalar_lea.hbm %s1713_s0, 256  ;;  %p1297_p12 = scmp.lt.u32.totalorder %s1599_s29, %s1713_s0 }
  0x73   : > { %p1294_p10 = pnand %p1293_p9, %p1292_p8  ;;  %p1298_p1 = scmp.lt.u32.totalorder %s1296_s27, %s1291_s21 }
  0x74   : > { %p1300_p7 = scmp.lt.u32.totalorder %s1291_s21, %s1599_s29 }
  0x75   : > { %p1295_p11 = pneg %p1294_p10  ;;  %p1299_p3 = por %p1298_p1, %p1297_p12 }
  0x77   : > { %p1301_p13 = por %p1300_p7, %p1299_p3 }
  0x79   : > { %p1302_p0 = pnand %p1301_p13, %p1295_p11 }
  0x7b   : > { %1305 = shalt.err (!%p1302_p0)
}
  0x7c   : > { %s1306_s26 = scalar_lea.vmem %s1605_s13, 128  ;;  %s1371_s20 = smov [#allocation2]  }
  0x7d   : > { %p1307_p2 = scmp.ne.s32.totalorder %s1605_s13, %s1306_s26  ;;  %s1311_s23 = sshll.u32 %s1371_s20, 4  ;;  %s1312_s23 = int_to_ptr.vmem [resolvable:$false] %s1311_s23 }
  0x7e   : > { %s1313_s28 = scalar_lea.vmem %s1312_s23, 256  ;;  %p1314_p10 = scmp.lt.s32.totalorder %s1605_s13, %s1312_s23 }
  0x7f   : > { %p1309_p4 = pnand %p1307_p2, %p1293_p9  ;;  %p1315_p12 = scmp.lt.s32.totalorder %s1313_s28, %s1306_s26 }
  0x81   : > { %p1310_p8 = pneg %p1309_p4  ;;  %p1316_p1 = por %p1315_p12, %p1314_p10 }
  0x83   : > { %p1317_p3 = pnand %p1316_p1, %p1310_p8 }
  0x85   : > { %1320 = shalt.err (!%p1317_p3)
}
  0x86   : > { %1100 = dma.hbm_to_vmem [thread:$0]  (!%p1601_p5), %s1599_s29, 128, %s1605_s13, %s327_s12  }
  0x87   : > { %p1732_p11 = scmp.ne.s32.totalorder %s1726_s16, 0 }
  0x88   : > { %s348_s30 = sand.u32 (!%p1732_p11), 1, %s1355_s10  }
  0x89   : > { %346 = sbr.rel (%p1732_p11) target bundleno = 1341 (0x53d), region = 56  ;;  %s933_s21 = sshll.u32 (!%p1732_p11), %s348_s30, 3 }
  0x8a   : > { %s349_s14 = scalar_lea.sflag (!%p1732_p11), [#allocation3], %s348_s30  ;;  %s352_s9 = scalar_lea.vmem (!%p1732_p11), [#allocation2], %s933_s21 }
  0x90   : > { %1338 = dma.done.wait (%p1590_p6), %s349_s14, 128  }
  0x91   : > { %1340 = vsyncadd (%p1590_p6), %s349_s14, 4294967168  ;;  %p1733_p9 = scmp.eq.s32.totalorder %s1445_s15, 0 }
  0x93   : > { %1342 = dma.done.wait (%p1733_p9), [#allocation5], 1152   ;;  %p1734_p7 = pmov %p1733_p9 }
  0x95   : > { %1344 = vsyncadd (%p1734_p7), [#allocation5], 4294966144  ;;  %p1735_p5 = pmov %p1734_p7 }
  0x97   : > { %1346 = dma.done.wait (%p1735_p5), [#allocation8], 2048   ;;  %p1736_p13 = pmov %p1735_p5 }
  0x98   : > { %v1372_v0 = vmov 0.0   ;;  %vm1373_vm0 = vmmov 0   ;;  %v1150_v1 = vld [vmem:[#allocation4] sm:$0xff]   ;;  %v407_v2 = vld [vmem:[%s352_s9] sm:$0xff]  ;;  %vm424_vm1 = vcmask 130048   ;;  %v1151_v4 = vld [vmem:[#allocation6] sm:$0xff]  }
  0x99   : > { %1348 = vsyncadd (%p1736_p13), [#allocation8], 4294965248  ;;  %1000 = vmatprep.subr.bf16.mxu0 %v1372_v0  ;;  %1002 = vmatprep.mubr.msk.bf16.mxu0 %vm1373_vm0, %v1372_v0  ;;  %v408_v3 = vpack.c.bf16 %v407_v2, %v407_v2  ;;  %v1152_v5 = vld [vmem:[#allocation6 + $0x8] sm:$0xff]   ;;  %v1153_v6 = vld [vmem:[#allocation6 + $0x10] sm:$0xff]   ;;  %vm807_vm2 = vcmask 64512   ;;  %p402_p6 = scmp.lt.s32.totalorder %s1445_s15, 1 }
  0x9a   : > { %1006 = vmatprep.subr.bf16.mxu1 %v1372_v0  ;;  %1022 = vmatprep.mubr.msk.bf16.mxu1 %vm1373_vm0, %v1372_v0  ;;  %v1154_v7 = vld [vmem:[#allocation6 + $0x18] sm:$0xff]   ;;  %v1155_v8 = vld [vmem:[#allocation6 + $0x20] sm:$0xff]   ;;  %v1156_v9 = vld [vmem:[#allocation6 + $0x28] sm:$0xff]   ;;  %s1737_s23 = sld [smem:[#allocation13_spill]] }
  0x9b   : > { %1001 = vmatpush3.bf16.msra.mxu0 %v1150_v1  ;;  %1007 = vmatpush3.bf16.msra.mxu1 %v1151_v4  ;;  %v1157_v10 = vld [vmem:[#allocation6 + $0x30] sm:$0xff]   ;;  %v1158_v11 = vld [vmem:[#allocation6 + $0x38] sm:$0xff]   ;;  %v1159_v12 = vld [vmem:[#allocation7] sm:$0xff]   ;;  %s1743_s15 = smov (!%p402_p6, %s1445_s15), 1 }
  0x9c   : > { %1026 = vmatprep.subr.bf16.mxu0 %v1372_v0  ;;  %1008 = vmatprep.subr.bf16.mxu1 %v1372_v0  ;;  %v1160_v13 = vld [vmem:[#allocation7 + $0x8] sm:$0xff]   ;;  %v1161_v14 = vld [vmem:[#allocation7 + $0x10] sm:$0xff]   ;;  %v1162_v15 = vld [vmem:[#allocation7 + $0x18] sm:$0xff]   ;;  %s938_s17 = sshll.u32 %s1743_s15, 3 }
  0x9d   : > { %v1163_v16 = vld [vmem:[#allocation7 + $0x20] sm:$0xff]   ;;  %v1164_v17 = vld [vmem:[#allocation7 + $0x28] sm:$0xff]   ;;  %v939_v18 = vld [vmem:[%s1715_s2] ss:$0 sm:$0xff] }
  0x9e   : > { %1003 = vmatmul.mubr.msk.bf16.vlgmr.msra.gmra.mrb[0].mxu0 %vm424_vm1, %v408_v3  ;;  %v1165_v26 = vld [vmem:[#allocation7 + $0x30] sm:$0xff]   ;;  %v1166_v27 = vld [vmem:[#allocation7 + $0x38] sm:$0xff]   ;;  %v1167_v28 = vld [vmem:[#allocation9] sm:$0xff]  }
  0x9f   : > { %1042 = vmatprep.mubr.msk.bf16.mxu0 %vm1373_vm0, %v1372_v0  ;;  %1009 = vmatpush3.bf16.msra.mxu1 %v1152_v5  ;;  %v1168_v29 = vld [vmem:[#allocation9 + $0x8] sm:$0xff]   ;;  %v1169_v30 = vld [vmem:[#allocation9 + $0x10] sm:$0xff]   ;;  %v1170_v31 = vld [vmem:[#allocation9 + $0x18] sm:$0xff]  }
  0xa0   : > { %1010 = vmatprep.subr.bf16.mxu1 %v1372_v0  ;;  %1027 = vmatpush3.bf16.msra.mxu0 %v1159_v12  ;;  %v1171_v32 = vld [vmem:[#allocation9 + $0x20] sm:$0xff]   ;;  %v1172_v33 = vld [vmem:[#allocation9 + $0x28] sm:$0xff]   ;;  %v942_v34 = vld [vmem:[%s1717_s4] ss:$0 sm:$0xff]  ;;  %s405_s28 = scalar_lea.vmem %s1737_s23, %s938_s17 }
  0xa1   : > { %1028 = vmatprep.subr.bf16.mxu0 %v1372_v0  ;;  %v1173_v42 = vld [vmem:[#allocation9 + $0x30] sm:$0xff]   ;;  %v1174_v43 = vld [vmem:[#allocation9 + $0x38] sm:$0xff]  }
  0xa2   : > { %v951_v44 = vld [vmem:[%s1719_s6] ss:$0 sm:$0xff] }
  0xa3   : > { %1011 = vmatpush3.bf16.msra.mxu1 %v1153_v6  ;;  %v960_v52 = vld [vmem:[%s1721_s8] ss:$0 sm:$0xff] }
  0xa4   : > { %1012 = vmatprep.subr.bf16.mxu1 %v1372_v0  ;;  %1029 = vmatpush3.bf16.msra.mxu0 %v1160_v13 }
  0xa5   : > { %1030 = vmatprep.subr.bf16.mxu0 %v1372_v0 }
  0xa7   : > { %1013 = vmatpush3.bf16.msra.mxu1 %v1154_v7 }
  0xa8   : > { %1014 = vmatprep.subr.bf16.mxu1 %v1372_v0  ;;  %1031 = vmatpush3.bf16.msra.mxu0 %v1161_v14 }
  0xa9   : > { %1032 = vmatprep.subr.bf16.mxu0 %v1372_v0 }
  0xab   : > { %1015 = vmatpush3.bf16.msra.mxu1 %v1155_v8 }
  0xac   : > { %1016 = vmatprep.subr.bf16.mxu1 %v1372_v0  ;;  %1033 = vmatpush3.bf16.msra.mxu0 %v1162_v15 }
  0xad   : > { %1034 = vmatprep.subr.bf16.mxu0 %v1372_v0 }
  0xaf   : > { %1017 = vmatpush3.bf16.msra.mxu1 %v1156_v9 }
  0xb0   : > { %1018 = vmatprep.subr.bf16.mxu1 %v1372_v0  ;;  %1035 = vmatpush3.bf16.msra.mxu0 %v1163_v16 }
  0xb1   : > { %1036 = vmatprep.subr.bf16.mxu0 %v1372_v0 }
  0xb3   : > { %1019 = vmatpush3.bf16.msra.mxu1 %v1157_v10 }
  0xb4   : > { %1020 = vmatprep.subr.bf16.mxu1 %v1372_v0  ;;  %1037 = vmatpush3.bf16.msra.mxu0 %v1164_v17 }
  0xb5   : > { %1038 = vmatprep.subr.bf16.mxu0 %v1372_v0 }
  0xb7   : > { %1021 = vmatpush3.bf16.msra.mxu1 %v1158_v11 }
  0xb8   : > { %1046 = vmatprep.subr.bf16.mxu1 %v1372_v0  ;;  %1039 = vmatpush3.bf16.msra.mxu0 %v1165_v26 }
  0xb9   : > { %1040 = vmatprep.subr.bf16.mxu0 %v1372_v0 }
  0xbc   : > { %1041 = vmatpush3.bf16.msra.mxu0 %v1166_v27 }
 0x171   : > { %v462_v19 = vpop.f32.mrb[0].mxu0 }
 0x172   : > { %v463_v20 = vadd.f32 %v939_v18, %v462_v19  ;;  %v1004_v21 = vpop.f32.mrb[1].mxu0 }
 0x173   : > { %v465_v22 = vpop.f32.mrb[2].mxu0 }
 0x174   : > { %v468_v23 = vmax.f32 %v463_v20, 0.0  ;;  %v1005_v24 = vpop.f32.mrb[3].mxu0 }
 0x176   : > { %v469_v25 = vpack.c.bf16 %v468_v23, %v468_v23 }
 0x178   : > { %1023 = vmatmul.mubr.bf16.vlgmr.msra.gmra.mrb[0].mxu1 %v469_v25 }
 0x179   : > { %1062 = vmatprep.mubr.msk.bf16.mxu1 %vm1373_vm0, %v1372_v0  ;;  %1047 = vmatpush3.bf16.msra.mxu1 %v1167_v28 }
 0x17a   : > { %1048 = vmatprep.subr.bf16.mxu1 %v1372_v0 }
 0x17d   : > { %1049 = vmatpush3.bf16.msra.mxu1 %v1168_v29 }
 0x17e   : > { %1050 = vmatprep.subr.bf16.mxu1 %v1372_v0 }
 0x181   : > { %1051 = vmatpush3.bf16.msra.mxu1 %v1169_v30 }
 0x182   : > { %1052 = vmatprep.subr.bf16.mxu1 %v1372_v0 }
 0x185   : > { %1053 = vmatpush3.bf16.msra.mxu1 %v1170_v31 }
 0x186   : > { %1054 = vmatprep.subr.bf16.mxu1 %v1372_v0 }
 0x189   : > { %1055 = vmatpush3.bf16.msra.mxu1 %v1171_v32 }
 0x18a   : > { %1056 = vmatprep.subr.bf16.mxu1 %v1372_v0 }
 0x18d   : > { %1057 = vmatpush3.bf16.msra.mxu1 %v1172_v33 }
 0x18e   : > { %1058 = vmatprep.subr.bf16.mxu1 %v1372_v0 }
 0x191   : > { %1059 = vmatpush3.bf16.msra.mxu1 %v1173_v42 }
 0x192   : > { %1060 = vmatprep.subr.bf16.mxu1 %v1372_v0 }
 0x195   : > { %1061 = vmatpush3.bf16.msra.mxu1 %v1174_v43 }
 0x24b   : > { %v575_v35 = vpop.f32.mrb[0].mxu1 }
 0x24c   : > { %v576_v36 = vadd.f32 %v942_v34, %v575_v35  ;;  %v1024_v37 = vpop.f32.mrb[1].mxu1 }
 0x24d   : > { %v578_v38 = vpop.f32.mrb[2].mxu1 }
 0x24e   : > { %v581_v39 = vmax.f32 %v576_v36, 0.0  ;;  %v1025_v40 = vpop.f32.mrb[3].mxu1 }
 0x250   : > { %v582_v41 = vpack.c.bf16 %v581_v39, %v581_v39 }
 0x252   : > { %1043 = vmatmul.mubr.bf16.vlgmr.msra.gmra.mrb[4].mxu0 %v582_v41 }
 0x325   : > { %v688_v45 = vpop.f32.mrb[4].mxu0 }
 0x326   : > { %v689_v46 = vadd.f32 %v951_v44, %v688_v45  ;;  %v1044_v47 = vpop.f32.mrb[5].mxu0 }
 0x327   : > { %v691_v48 = vpop.f32.mrb[6].mxu0 }
 0x328   : > { %v694_v49 = vmax.f32 %v689_v46, 0.0  ;;  %v1045_v50 = vpop.f32.mrb[7].mxu0 }
 0x32a   : > { %v695_v51 = vpack.c.bf16 %v694_v49, %v694_v49 }
 0x32c   : > { %1063 = vmatmul.mubr.bf16.vlgmr.msra.gmra.mrb[4].mxu1 %v695_v51 }
 0x3ff   : > { %v801_v53 = vpop.f32.mrb[4].mxu1 }
 0x400   : > { %v802_v54 = vadd.f32 %v960_v52, %v801_v53  ;;  %v1064_v55 = vpop.f32.mrb[5].mxu1 }
 0x401   : > { %v804_v56 = vpop.f32.mrb[6].mxu1 }
 0x402   : > { %v1065_v57 = vpop.f32.mrb[7].mxu1  ;;  %v808_v58 = vsel %vm807_vm2, %v802_v54, -inf }
 0x403   : > { %809 = vmax.xlane.f32.xlu0 %v808_v58 }
 0x490   : > { %v810_v59 = vpop.xlane.xlu0 %809 }
 0x491   : > { %v811_v60 = vsub.f32 %v802_v54, %v810_v59 }
 0x493   : > { %v812_v61 = vmul.f32 1.442695, %v811_v60 }
 0x495   : > { %1175 = vpow2.f32 %v812_v61 }
 0x49f   : > { %v1176_v62 = vpop.eup %1175 }
 0x4a0   : > { %v814_v63 = vsel %vm807_vm2, %v1176_v62, 0.0 }
 0x4a1   : > { %815 = vadd.xlane.f32.xlu0 %v814_v63 }
 0x52e   : > { %v816_v0 = vpop.xlane.xlu0 %815 }
 0x52f   : > { %1177 = vrcp.f32 %v816_v0 }
 0x539   : > { %v1178_v1 = vpop.eup %1177 }
 0x53a   : > { %v818_v2 = vmul.f32 %v1178_v1, %v1176_v62 }
 0x53c   : > { %819 = vst.msk [vmem:[%s405_s28] sm:$0xff] %vm807_vm2, %v818_v2 }
 0x53d PF: > { %p21_p0 = scmp.ge.s32.totalorder %s1574_s19, 4   ;;  %s1738_s30 = smov %s1355_s10 }
 0x53e   : > { %s1739_s10 = smov %s1359_s11  ;;  %s1740_s11 = smov %s1586_s24 }
 0x53f   : > { %s1741_s12 = smov %s1574_s19  ;;  %23 = sbr.rel (!%p21_p0) target bundleno = 7 (0x7), region = 112 }
 0x546   :  { %839 = vsyncpa [#allocation3], 1 }
 0x547   :  { %841 = vsyncpa [#allocation3 + $0x1], 1 }
 0x548   :  { %842 = vsyncpa [#allocation5], 1 }
 0x549   :  { %843 = vsyncpa [#allocation8], 1 }

</bundles_post_ra>
